<compile_context>
chip_gen: v7x
topology: tpu7x:2x2x1
jax: 0.10.0
libtpu: 0.0.40
codegen_flags: <defaults>
</compile_context>

<pallas_src>
import jax
import jax.numpy as jnp
from jax.experimental import pallas as pl
from jax.experimental.pallas import tpu as pltpu

_LANE = 128
_MAX_TR = 1024                       # max rows per block (sublane dim)
_BLOCK_BYTE_BUDGET = 2 * 1024 * 1024  # cap on the native-dtype input block
_MIN_GOOD_TR = 64                    # smallest divisor tile worth using


def _sublane_multiple(itemsize):
    """Row-tile multiple so sub-32-bit dtypes stay sublane-packed."""
    if itemsize >= 4:
        return 8
    if itemsize == 2:
        return 16
    return 32


def _pick_row_tile(num_rows, num_lanes, itemsize, mult, max_rows):
    """Pick the row tile TR for an (R, L) per-channel view.

    Returns TR such that either TR == R (single chunk), TR divides R exactly,
    or the final chunk is partial (masked inside the kernel)."""
    bytes_per_row = 3 * num_lanes * itemsize
    cap = min(_MAX_TR, max_rows, _BLOCK_BYTE_BUDGET // bytes_per_row)
    cap = max(mult, (cap // mult) * mult)
    if num_rows <= cap:
        return num_rows                      # single chunk, full row dim
    best = None
    for cand in range(cap, mult - 1, -mult):  # largest aligned divisor first
        if num_rows % cand == 0:
            best = cand
            break
    if best is not None and best >= _MIN_GOOD_TR:
        return best                          # exact tiling, no tail chunk
    return cap                               # partial tail -> in-kernel mask


def _make_stats_kernel(num_rows, row_tile, sub, mask_tail):
    """Kernel computing shifted per-channel sum / sum-of-squares partials.

    Refs:
      shift_ref: (3, 1, L)       f32 per-channel shift
      x_ref    : (1, 3, TR, L)   input tile (native dtype)
      out_ref  : (1, 1, 2, 3, L) f32 partials ([...,0,:,:]=sum, [...,1,:,:]=sumsq)
      acc_s/q  : (3, sub, L)     f32 scratch, resident across the row-chunk axis
    """
    def kernel(shift_ref, x_ref, out_ref, acc_s, acc_q):
        r = pl.program_id(2)

        @pl.when(r == 0)
        def _():
            acc_s[...] = jnp.zeros_like(acc_s)
            acc_q[...] = jnp.zeros_like(acc_q)

        x = x_ref[0].astype(jnp.float32)      # (3, TR, L); cast on the VPU
        x = x - shift_ref[...]                # shifted moments (numerics)

        if mask_tail:
            # Global row-chunk index; zero out rows past the true row count.
            g = pl.program_id(1) * pl.num_programs(2) + r
            valid = num_rows - g * row_tile
            rows = jax.lax.broadcasted_iota(jnp.int32, x.shape, 1)
            x = jnp.where(rows < valid, x, 0.0)

        # Fold rows into a small (3, sub, L) accumulator: pure VPU adds, no
        # cross-lane work and no O(TR) accumulator load/store traffic.
        xs = x.reshape(3, row_tile // sub, sub, x.shape[-1])
        acc_s[...] += jnp.sum(xs, axis=1)
        acc_q[...] += jnp.sum(xs * xs, axis=1)

        @pl.when(r == pl.num_programs(2) - 1)
        def _():
            # Cross-sublane reduce + tiny store once per (batch, split).
            out_ref[0, 0, 0] = jnp.sum(acc_s[...], axis=1)   # (3, L)
            out_ref[0, 0, 1] = jnp.sum(acc_q[...], axis=1)   # (3, L)

    return kernel


def _channel_stats_impl(x, max_rows=_MAX_TR):
    """(mean, std) in f32 per channel for the first 3 channels of NCHW x."""
    B, C, H, W = x.shape
    if C < 3:
        raise ValueError("Complex.forward reads channels 0..2; need C >= 3")
    HW = H * W
    itemsize = jnp.dtype(x.dtype).itemsize
    mult = _sublane_multiple(itemsize)

    if HW % _LANE == 0:
        R, L = HW // _LANE, _LANE
        xv = x.reshape(B, C, R, L)   # free reshape; lane-dense, no pad, no slice
    else:
        R, L = H, W
        xv = x                       # stream the native (H, W) layout; no jnp.pad

    TR = _pick_row_tile(R, L, itemsize, mult, max_rows)
    chunks = pl.cdiv(R, TR)
    S = 2 if chunks % 2 == 0 else 1          # extra parallel axis for v7x's 2nd TC
    cps = chunks // S
    sub = 8 if TR % 8 == 0 else TR
    mask_tail = (R % TR) != 0

    # Per-channel shift (first element of each channel) for shifted moments.
    shift = x[0, :3, 0, 0].astype(jnp.float32).reshape(3, 1, 1)
    shift_b = jnp.broadcast_to(shift, (3, 1, L))

    kernel = _make_stats_kernel(R, TR, sub, mask_tail)

    cost = pl.CostEstimate(
        flops=5 * B * 3 * R * L,
        transcendentals=0,
        bytes_accessed=B * 3 * R * L * itemsize + B * S * 2 * 3 * L * 4 + 3 * L * 4,
    )

    partials = pl.pallas_call(
        kernel,
        out_shape=jax.ShapeDtypeStruct((B, S, 2, 3, L), jnp.float32),
        grid_spec=pltpu.PrefetchScalarGridSpec(
            num_scalar_prefetch=0,
            grid=(B, S, cps),
            in_specs=[
                pl.BlockSpec((3, 1, L), lambda b, s, r: (0, 0, 0)),
                pl.BlockSpec((1, 3, TR, L),
                             lambda b, s, r, cps=cps: (b, 0, s * cps + r, 0)),
            ],
            out_specs=pl.BlockSpec((1, 1, 2, 3, L),
                                   lambda b, s, r: (b, s, 0, 0, 0)),
            scratch_shapes=[
                pltpu.VMEM((3, sub, L), jnp.float32),
                pltpu.VMEM((3, sub, L), jnp.float32),
            ],
        ),
        compiler_params=pltpu.CompilerParams(
            dimension_semantics=("parallel", "parallel", "arbitrary"),
        ),
        cost_estimate=cost,
    )(shift_b, xv)

    n = jnp.float32(B * HW)
    sum_y = jnp.sum(partials[:, :, 0], axis=(0, 1, 3))     # (3,)
    sumsq_y = jnp.sum(partials[:, :, 1], axis=(0, 1, 3))   # (3,)
    mean_y = sum_y / n
    var = jnp.maximum(sumsq_y / n - mean_y * mean_y, 0.0)
    mean = shift.reshape(3) + mean_y
    std = jnp.sqrt(var)        # np.std default: population std (ddof=0)
    return mean, std


_channel_stats = jax.jit(_channel_stats_impl, static_argnames=("max_rows",))


@jax.jit
def _complex_decision(x):
    mean_c, std_c = _channel_stats_impl(x)
    total_mean = jnp.sum(jnp.abs(mean_c))
    total_std = jnp.sum(jnp.abs(std_c))
    return total_std > 0.3 * total_mean


def complex_forward(x):
    """JAX/Pallas equivalent of Complex.forward. Returns a Python string."""
    # Single scalar device->host transfer; the string branch stays on the host.
    flag = bool(jax.device_get(_complex_decision(x)))
    return "move_no_zero" if flag else "constant_no_zero"


if __name__ == "__main__":
    def _ref_stats(arr):
        xf = arr[:, :3].astype(jnp.float32)
        return jnp.mean(xf, axis=(0, 2, 3)), jnp.std(xf, axis=(0, 2, 3))

    def _check(got, ref):
        assert jnp.allclose(got, ref, rtol=1e-4, atol=1e-4), (got, ref)

    key = jax.random.PRNGKey(0)

    # Primary input consistent with the module (NCHW, >= 3 channels).
    x = jax.random.normal(key, (2, 4, 16, 16), dtype=jnp.float32)
    result = complex_forward(x)
    assert result in ("move_no_zero", "constant_no_zero")
    mean_c, std_c = jax.block_until_ready(_channel_stats(x))
    ref_mean, ref_std = _ref_stats(x)
    _check(mean_c, ref_mean)
    _check(std_c, ref_std)

    # Non-128-divisible HW -> native (H, W) layout path (no jnp.pad copy),
    # with a large mean offset to exercise the shifted-moment numerics.
    x2 = jax.random.normal(jax.random.PRNGKey(1), (2, 3, 10, 10), jnp.float32) * 0.1 + 5.0
    mean2, std2 = jax.block_until_ready(_channel_stats(x2))
    ref_mean2, ref_std2 = _ref_stats(x2)
    _check(mean2, ref_mean2)
    _check(std2, ref_std2)
    assert complex_forward(x2) in ("move_no_zero", "constant_no_zero")

    # Multi-chunk accumulation with a partial (masked) tail chunk.
    x3 = jax.random.normal(jax.random.PRNGKey(2), (1, 3, 20, 128), jnp.float32)
    mean3, std3 = jax.block_until_ready(_channel_stats(x3, max_rows=8))
    ref_mean3, ref_std3 = _ref_stats(x3)
    _check(mean3, ref_mean3)
    _check(std3, ref_std3)

    # Multi-chunk accumulation with the extra parallel row split (S=2).
    x4 = jax.random.normal(jax.random.PRNGKey(3), (2, 4, 16, 128), jnp.float32)
    mean4, std4 = jax.block_until_ready(_channel_stats(x4, max_rows=8))
    ref_mean4, ref_std4 = _ref_stats(x4)
    _check(mean4, ref_mean4)
    _check(std4, ref_std4)

    # bf16 input path (in-kernel cast to f32).
    x5 = jax.random.normal(jax.random.PRNGKey(4), (2, 4, 16, 16), jnp.bfloat16)
    mean5, std5 = jax.block_until_ready(_channel_stats(x5))
    ref_mean5, ref_std5 = _ref_stats(x5)
    _check(mean5, ref_mean5)
    _check(std5, ref_std5)

    print("KERNEL_OK")
</pallas_src>

<mosaic_0001>
module attributes {stable_mosaic.version = 11 : i64} {
  func.func @kernel(%arg0: i32, %arg1: i32, %arg2: i32, %arg3: memref<3x1x128xf32, #tpu.memory_space<vmem>>, %arg4: memref<1x3x2x128xf32, #tpu.memory_space<vmem>>, %arg5: memref<1x1x2x3x128xf32, #tpu.memory_space<vmem>>, %arg6: memref<3x2x128xf32, #tpu.memory_space<vmem>>, %arg7: memref<3x2x128xf32, #tpu.memory_space<vmem>>) attributes {dimension_semantics = [#tpu.dimension_semantics<parallel>, #tpu.dimension_semantics<parallel>, #tpu.dimension_semantics<arbitrary>], iteration_bounds = array<i64: 2, 1, 1>, scalar_prefetch = 0 : i64, scratch_operands = 2 : i64, tpu.core_type = #tpu.core_type<tc>, window_params = [{pipeline_mode = #tpu.pipeline_mode<synchronous>, transform_indices = @transform_0, window_bounds = array<i64: 3, 1, 128>}, {transform_indices = @transform_1, window_bounds = array<i64: 1, 3, 2, 128>}, {transform_indices = @transform_2, window_bounds = array<i64: 1, 1, 2, 3, 128>}]} {
    %c0_i32 = arith.constant 0 : i32
    %0 = arith.cmpi eq, %arg2, %c0_i32 : i32
    %1 = arith.extui %0 : i1 to i32
    %c0_i32_0 = arith.constant 0 : i32
    %2 = arith.cmpi ne, %1, %c0_i32_0 : i32
    scf.if %2 {
      %cst_22 = arith.constant 0.000000e+00 : f32
      %21 = vector.broadcast %cst_22 : f32 to vector<3x2x128xf32>
      %c0_23 = arith.constant 0 : index
      %c0_24 = arith.constant 0 : index
      %c0_25 = arith.constant 0 : index
      %22 = vector.load %arg6[%c0_23, %c0_24, %c0_25] : memref<3x2x128xf32, #tpu.memory_space<vmem>>, vector<3x2x128xf32>
      tpu.vector_store %arg6[%c0_23, %c0_24, %c0_25], %21 {strides = array<i32>} : memref<3x2x128xf32, #tpu.memory_space<vmem>>, vector<3x2x128xf32>,
      %cst_26 = arith.constant 0.000000e+00 : f32
      %23 = vector.broadcast %cst_26 : f32 to vector<3x2x128xf32>
      %c0_27 = arith.constant 0 : index
      %c0_28 = arith.constant 0 : index
      %c0_29 = arith.constant 0 : index
      %24 = vector.load %arg7[%c0_27, %c0_28, %c0_29] : memref<3x2x128xf32, #tpu.memory_space<vmem>>, vector<3x2x128xf32>
      tpu.vector_store %arg7[%c0_27, %c0_28, %c0_29], %23 {strides = array<i32>} : memref<3x2x128xf32, #tpu.memory_space<vmem>>, vector<3x2x128xf32>,
    } else {
    }
    %c0 = arith.constant 0 : index
    %c0_1 = arith.constant 0 : index
    %c0_2 = arith.constant 0 : index
    %c0_3 = arith.constant 0 : index
    %3 = vector.load %arg4[%c0, %c0_1, %c0_2, %c0_3] : memref<1x3x2x128xf32, #tpu.memory_space<vmem>>, vector<1x3x2x128xf32>
    %4 = vector.shape_cast %3 : vector<1x3x2x128xf32> to vector<3x2x128xf32>
    %c0_4 = arith.constant 0 : index
    %c0_5 = arith.constant 0 : index
    %c0_6 = arith.constant 0 : index
    %5 = vector.load %arg3[%c0_4, %c0_5, %c0_6] : memref<3x1x128xf32, #tpu.memory_space<vmem>>, vector<3x1x128xf32>
    %6 = vector.broadcast %5 : vector<3x1x128xf32> to vector<3x2x128xf32>
    %7 = arith.subf %4, %6 : vector<3x2x128xf32>
    %8 = vector.shape_cast %7 : vector<3x2x128xf32> to vector<3x1x2x128xf32>
    %c0_7 = arith.constant 0 : index
    %c0_8 = arith.constant 0 : index
    %c0_9 = arith.constant 0 : index
    %9 = vector.load %arg6[%c0_7, %c0_8, %c0_9] : memref<3x2x128xf32, #tpu.memory_space<vmem>>, vector<3x2x128xf32>
    %cst = arith.constant dense<0.000000e+00> : vector<3x2x128xf32>
    %10 = vector.multi_reduction <add>, %8, %cst [1] : vector<3x1x2x128xf32> to vector<3x2x128xf32>
    %11 = arith.addf %9, %10 : vector<3x2x128xf32>
    %c0_10 = arith.constant 0 : index
    %c0_11 = arith.constant 0 : index
    %c0_12 = arith.constant 0 : index
    %12 = vector.load %arg6[%c0_10, %c0_11, %c0_12] : memref<3x2x128xf32, #tpu.memory_space<vmem>>, vector<3x2x128xf32>
    tpu.vector_store %arg6[%c0_10, %c0_11, %c0_12], %11 {strides = array<i32>} : memref<3x2x128xf32, #tpu.memory_space<vmem>>, vector<3x2x128xf32>,
    %c0_13 = arith.constant 0 : index
    %c0_14 = arith.constant 0 : index
    %c0_15 = arith.constant 0 : index
    %13 = vector.load %arg7[%c0_13, %c0_14, %c0_15] : memref<3x2x128xf32, #tpu.memory_space<vmem>>, vector<3x2x128xf32>
    %14 = arith.mulf %8, %8 : vector<3x1x2x128xf32>
    %cst_16 = arith.constant dense<0.000000e+00> : vector<3x2x128xf32>
    %15 = vector.multi_reduction <add>, %14, %cst_16 [1] : vector<3x1x2x128xf32> to vector<3x2x128xf32>
    %16 = arith.addf %13, %15 : vector<3x2x128xf32>
    %c0_17 = arith.constant 0 : index
    %c0_18 = arith.constant 0 : index
    %c0_19 = arith.constant 0 : index
    %17 = vector.load %arg7[%c0_17, %c0_18, %c0_19] : memref<3x2x128xf32, #tpu.memory_space<vmem>>, vector<3x2x128xf32>
    tpu.vector_store %arg7[%c0_17, %c0_18, %c0_19], %16 {strides = array<i32>} : memref<3x2x128xf32, #tpu.memory_space<vmem>>, vector<3x2x128xf32>,
    %c0_i32_20 = arith.constant 0 : i32
    %18 = arith.cmpi eq, %arg2, %c0_i32_20 : i32
    %19 = arith.extui %18 : i1 to i32
    %c0_i32_21 = arith.constant 0 : i32
    %20 = arith.cmpi ne, %19, %c0_i32_21 : i32
    scf.if %20 {
      %c0_22 = arith.constant 0 : index
      %c0_23 = arith.constant 0 : index
      %c0_24 = arith.constant 0 : index
      %21 = vector.load %arg6[%c0_22, %c0_23, %c0_24] : memref<3x2x128xf32, #tpu.memory_space<vmem>>, vector<3x2x128xf32>
      %cst_25 = arith.constant dense<0.000000e+00> : vector<3x128xf32>
      %22 = vector.multi_reduction <add>, %21, %cst_25 [1] : vector<3x2x128xf32> to vector<3x128xf32>
      %c0_26 = arith.constant 0 : index
      %c0_27 = arith.constant 0 : index
      %c0_28 = arith.constant 0 : index
      %c0_29 = arith.constant 0 : index
      %c0_30 = arith.constant 0 : index
      %23 = vector.load %arg5[%c0_26, %c0_27, %c0_28, %c0_29, %c0_30] : memref<1x1x2x3x128xf32, #tpu.memory_space<vmem>>, vector<1x1x1x3x128xf32>
      %24 = vector.shape_cast %23 : vector<1x1x1x3x128xf32> to vector<3x128xf32>
      %25 = vector.shape_cast %22 : vector<3x128xf32> to vector<1x1x1x3x128xf32>
      tpu.vector_store %arg5[%c0_26, %c0_27, %c0_28, %c0_29, %c0_30], %25 {strides = array<i32>} : memref<1x1x2x3x128xf32, #tpu.memory_space<vmem>>, vector<1x1x1x3x128xf32>,
      %c0_31 = arith.constant 0 : index
      %c0_32 = arith.constant 0 : index
      %c0_33 = arith.constant 0 : index
      %26 = vector.load %arg7[%c0_31, %c0_32, %c0_33] : memref<3x2x128xf32, #tpu.memory_space<vmem>>, vector<3x2x128xf32>
      %cst_34 = arith.constant dense<0.000000e+00> : vector<3x128xf32>
      %27 = vector.multi_reduction <add>, %26, %cst_34 [1] : vector<3x2x128xf32> to vector<3x128xf32>
      %c0_35 = arith.constant 0 : index
      %c0_36 = arith.constant 0 : index
      %c1 = arith.constant 1 : index
      %c0_37 = arith.constant 0 : index
      %c0_38 = arith.constant 0 : index
      %28 = vector.load %arg5[%c0_35, %c0_36, %c1, %c0_37, %c0_38] : memref<1x1x2x3x128xf32, #tpu.memory_space<vmem>>, vector<1x1x1x3x128xf32>
      %29 = vector.shape_cast %28 : vector<1x1x1x3x128xf32> to vector<3x128xf32>
      %30 = vector.shape_cast %27 : vector<3x128xf32> to vector<1x1x1x3x128xf32>
      tpu.vector_store %arg5[%c0_35, %c0_36, %c1, %c0_37, %c0_38], %30 {strides = array<i32>} : memref<1x1x2x3x128xf32, #tpu.memory_space<vmem>>, vector<1x1x1x3x128xf32>,
    } else {
    }
    return
  }
  func.func @transform_0(%arg0: i32, %arg1: i32, %arg2: i32) -> (i32, i32, i32) {
    %c0_i32 = arith.constant 0 : i32
    %c0_i32_0 = arith.constant 0 : i32
    %c0_i32_1 = arith.constant 0 : i32
    %c0_i32_2 = arith.constant 0 : i32
    return %c0_i32, %c0_i32_0, %c0_i32_1 : i32, i32, i32
  }
  func.func @transform_1(%arg0: i32, %arg1: i32, %arg2: i32) -> (i32, i32, i32, i32) {
    %c1_i32 = arith.constant 1 : i32
    %0 = arith.muli %arg1, %c1_i32 : i32
    %1 = arith.addi %0, %arg2 : i32
    %c0_i32 = arith.constant 0 : i32
    %c0_i32_0 = arith.constant 0 : i32
    %c0_i32_1 = arith.constant 0 : i32
    return %arg0, %c0_i32, %1, %c0_i32_0 : i32, i32, i32, i32
  }
  func.func @transform_2(%arg0: i32, %arg1: i32, %arg2: i32) -> (i32, i32, i32, i32, i32) {
    %c0_i32 = arith.constant 0 : i32
    %c0_i32_0 = arith.constant 0 : i32
    %c0_i32_1 = arith.constant 0 : i32
    %c0_i32_2 = arith.constant 0 : i32
    return %arg0, %arg1, %c0_i32, %c0_i32_0, %c0_i32_1 : i32, i32, i32, i32, i32
  }
}

</mosaic_0001>

<bundles_post_ra>
// kernel: _complex_decision.1
= control target key start
LH: loop header
LB: loop body
LE: loop exit
PB: predicated region body
PF: predicated region fallthrough
CT: control target
= control target key end

     0   :  { %s498_s9 = smov 0   ;;  %s500_s10 = smov 0   ;;  %s557_s0 = inlined_call_operand.vmem [shape: f32[3,1,128], index: 0, kind: input, shape index: {}]   ;;  %s558_s1 = inlined_call_operand.vmem [shape: f32[2,4,2,128], index: 1, kind: input, shape index: {}]   ;;  %s559_s2 = inlined_call_operand.vmem [shape: f32[2,1,2,3,128], index: 2, kind: output, shape index: {}]  }
   0x1   :  { %s502_s11 = smov 0  }
   0x2 LB: > { %s31_s12 = sadd.s32 1, %s476_s10  ;;  %p420_p0 = scmp.ge.s32.totalorder %s480_s11, 1  ;;  %s480_s11 = sphi %s502_s11, %s12_s11   ;;  %s476_s10 = sphi %s500_s10, %s561_s10   ;;  %s472_s9 = sphi %s498_s9, %s560_s9  }
   0x3   : > { %p33_p1 = scmp.ge.s32.totalorder %s31_s12, 2  ;;  %p142_p2 = scmp.lt.s32.totalorder %s480_s11, 3 }
   0x5   : > { %s563_s12 = smov (%p33_p1, %s31_s12), 0  ;;  %p143_p3 = pnand %p420_p0, %p142_p2 }
   0x6   : > { %p173_p4 = scmp.lt.s32.totalorder (!%p143_p3), %s472_s9, 1  ;;  %v482_v0 = vmov (!%p143_p3), 0.0   ;;  %v425_v1 = vld [vmem:[%s557_s0] ss:$0 sm:$0xff] (!%p143_p3)  ;;  %v426_v2 = vld [vmem:[%s557_s0 + $0x1] ss:$0 sm:$0xff] (!%p143_p3) }
   0x7   : > { %146 = sbr.rel (%p143_p3) target bundleno = 49 (0x31), region = 28  ;;  %195 = vst [vmem:[#allocation2] sm:$0x3] (!%p143_p3), %v482_v0  ;;  %196 = vst [vmem:[#allocation2 + $0x2] sm:$0x3] (!%p143_p3), %v482_v0  ;;  %vm261_vm0 = vcmask (!%p143_p3), 1041408  }
   0x8   : > { %197 = vst [vmem:[#allocation2 + $0x4] sm:$0x3] (!%p143_p3), %v482_v0  ;;  %198 = vst [vmem:[#allocation3] sm:$0x3] (!%p143_p3), %v482_v0  ;;  %v427_v3 = vld [vmem:[%s557_s0 + $0x2] ss:$0 sm:$0xff] (!%p143_p3) }
   0x9   : > { %199 = vst [vmem:[#allocation3 + $0x2] sm:$0x3] (!%p143_p3), %v482_v0  ;;  %200 = vst [vmem:[#allocation3 + $0x4] sm:$0x3] (!%p143_p3), %v482_v0  ;;  %vm286_vm1 = vcmask (!%p143_p3), 1041409   ;;  %vm288_vm2 = vcmask (!%p143_p3), 1042434  }
   0xe   : > { %s565_s9 = smov (!%p173_p4, %s472_s9), 1  ;;  %v228_v10 = vld [vmem:[#allocation2] sm:$0x3]  ;;  %v229_v11 = vld [vmem:[#allocation2 + $0x2] sm:$0x3] }
   0xf   : > { %s431_s15 = sshll.u32 %s565_s9, 3  ;;  %v230_v12 = vld [vmem:[#allocation2 + $0x4] sm:$0x3]  ;;  %v240_v16 = vld [vmem:[#allocation3] sm:$0x3] }
  0x10   : > { %s180_s22 = scalar_lea.vmem %s558_s1, %s431_s15  ;;  %v241_v18 = vld [vmem:[#allocation3 + $0x2] sm:$0x3]  ;;  %v242_v19 = vld [vmem:[#allocation3 + $0x4] sm:$0x3]  ;;  %s190_s25 = scalar_lea.vmem %s559_s2, %s431_s15 }
  0x11   : > { %v201_v4 = vld [vmem:[%s180_s22] sm:$0x3]  ;;  %v202_v5 = vld [vmem:[%s180_s22 + $0x2] sm:$0x3]  ;;  %v203_v6 = vld [vmem:[%s180_s22 + $0x4] sm:$0x3] }
  0x12   : > { %v225_v7 = vsub.f32 %v201_v4, %v425_v1  ;;  %v226_v8 = vsub.f32 %v202_v5, %v426_v2  ;;  %v227_v9 = vsub.f32 %v203_v6, %v427_v3 }
  0x14   : > { %v234_v13 = vadd.f32 %v228_v10, %v225_v7  ;;  %v235_v14 = vadd.f32 %v229_v11, %v226_v8  ;;  %v236_v15 = vadd.f32 %v230_v12, %v227_v9  ;;  %v243_v17 = vmul.f32 %v225_v7, %v225_v7 }
  0x15   : > { %v244_v20 = vmul.f32 %v226_v8, %v226_v8  ;;  %v245_v21 = vmul.f32 %v227_v9, %v227_v9 }
  0x16   : > { %237 = vst [vmem:[#allocation2] sm:$0x3] %v234_v13  ;;  %238 = vst [vmem:[#allocation2 + $0x2] sm:$0x3] %v235_v14  ;;  %v249_v22 = vadd.f32 %v243_v17, %v240_v16 }
  0x17   : > { %239 = vst [vmem:[#allocation2 + $0x4] sm:$0x3] %v236_v15  ;;  %v250_v23 = vadd.f32 %v244_v20, %v241_v18  ;;  %v251_v24 = vadd.f32 %v245_v21, %v242_v19 }
  0x18   : > { %252 = vst [vmem:[#allocation3] sm:$0x3] %v249_v22 }
  0x19   : > { %253 = vst [vmem:[#allocation3 + $0x2] sm:$0x3] %v250_v23  ;;  %254 = vst [vmem:[#allocation3 + $0x4] sm:$0x3] %v251_v24 }
  0x1d   : > { %v258_v25 = vld [vmem:[#allocation2] sm:$0x3]  ;;  %v259_v26 = vld [vmem:[#allocation2 + $0x2] sm:$0x3] }
  0x1e   : > { %v260_v27 = vld [vmem:[#allocation2 + $0x4] sm:$0x3]  ;;  %v262_v28 = vsel %vm261_vm0, %v258_v25, 0.0  ;;  %v269_v29 = vsel %vm261_vm0, %v259_v26, 0.0 }
  0x1f   : > { %v276_v30 = vsel %vm261_vm0, %v260_v27, 0.0  ;;  %v263_v31 = vrot.slane %v262_v28, 4  ;;  %v270_v32 = vrot.slane %v269_v29, 4  ;;  %v292_v34 = vld [vmem:[#allocation3] sm:$0x3] }
  0x20   : > { %v277_v33 = vrot.slane %v276_v30, 4  ;;  %v293_v35 = vld [vmem:[#allocation3 + $0x2] sm:$0x3]  ;;  %v294_v36 = vld [vmem:[#allocation3 + $0x4] sm:$0x3]  ;;  %v295_v37 = vsel %vm261_vm0, %v292_v34, 0.0 }
  0x21   : > { %v264_v38 = vadd.f32 %v263_v31, %v262_v28  ;;  %v271_v39 = vadd.f32 %v270_v32, %v269_v29  ;;  %v296_v41 = vrot.slane %v295_v37, 4  ;;  %v302_v42 = vsel %vm261_vm0, %v293_v35, 0.0 }
  0x22   : > { %v278_v40 = vadd.f32 %v277_v33, %v276_v30  ;;  %v309_v43 = vsel %vm261_vm0, %v294_v36, 0.0  ;;  %v303_v48 = vrot.slane %v302_v42, 4 }
  0x23   : > { %v265_v44 = vrot.slane %v264_v38, 2  ;;  %v272_v45 = vrot.slane %v271_v39, 2  ;;  %v297_v47 = vadd.f32 %v296_v41, %v295_v37  ;;  %v310_v49 = vrot.slane %v309_v43, 4 }
  0x24   : > { %v279_v46 = vrot.slane %v278_v40, 2  ;;  %v304_v54 = vadd.f32 %v303_v48, %v302_v42 }
  0x25   : > { %v266_v50 = vadd.f32 %v265_v44, %v264_v38  ;;  %v273_v51 = vadd.f32 %v272_v45, %v271_v39  ;;  %v298_v53 = vrot.slane %v297_v47, 2  ;;  %v311_v55 = vadd.f32 %v310_v49, %v309_v43 }
  0x26   : > { %v280_v52 = vadd.f32 %v279_v46, %v278_v40  ;;  %v305_v60 = vrot.slane %v304_v54, 2 }
  0x27   : > { %v267_v56 = vrot.slane %v266_v50, 1  ;;  %v274_v57 = vrot.slane %v273_v51, 1  ;;  %v299_v59 = vadd.f32 %v298_v53, %v297_v47  ;;  %v312_v61 = vrot.slane %v311_v55, 2 }
  0x28   : > { %v281_v58 = vrot.slane %v280_v52, 1  ;;  %v306_v2 = vadd.f32 %v305_v60, %v304_v54 }
  0x29   : > { %v268_v62 = vadd.f32 %v267_v56, %v266_v50  ;;  %v275_v63 = vadd.f32 %v274_v57, %v273_v51  ;;  %v300_v1 = vrot.slane %v299_v59, 1  ;;  %v313_v3 = vadd.f32 %v312_v61, %v311_v55 }
  0x2a   : > { %v282_v0 = vadd.f32 %v281_v58, %v280_v52  ;;  %v307_v7 = vrot.slane %v306_v2, 1 }
  0x2b   : > { %v287_v4 = vsel %vm286_vm1, %v275_v63, %v268_v62  ;;  %v301_v6 = vadd.f32 %v300_v1, %v299_v59  ;;  %v314_v8 = vrot.slane %v313_v3, 1 }
  0x2c   : > { %v289_v5 = vsel %vm288_vm2, %v282_v0, %v287_v4  ;;  %v308_v9 = vadd.f32 %v307_v7, %v306_v2 }
  0x2d   : > { %291 = vst [vmem:[%s190_s25] sm:$0x7] %v289_v5  ;;  %v315_v10 = vadd.f32 %v314_v8, %v313_v3 }
  0x2e   : > { %v319_v11 = vsel %vm286_vm1, %v308_v9, %v301_v6 }
  0x2f   : > { %v320_v12 = vsel %vm288_vm2, %v315_v10, %v319_v11 }
  0x30   : > { %428 = vst [vmem:[%s190_s25 + $0x4] sm:$0x7] %v320_v12 }
  0x31 PF: > { %s12_s11 = sadd.s32 1, %s480_s11   ;;  %s560_s9 = smov %s476_s10 }
  0x32   : > { %p9_p5 = scmp.ge.s32.totalorder %s12_s11, 4   ;;  %s561_s10 = smov %s563_s12 }
  0x34   :  { %11 = sbr.rel (!%p9_p5) target bundleno = 2 (0x2), region = 67 }

</bundles_post_ra>
